<compile_context>
chip_gen: v5e
topology: v5e:2x2
jax: 0.10.0
libtpu: 0.0.40
codegen_flags: <defaults>
</compile_context>

<pallas_src>
import jax
import jax.numpy as jnp
import numpy as np
from jax import lax
from jax.experimental import pallas as pl
from jax.experimental.pallas import tpu as pltpu


def _inception_concat_kernel(x_ref, wb_ref, wf_ref, o_ref, ps_ref, pq_ref,
                             pad_ref):
    """One batch element: bottleneck -> fused (convs + maxpool-conv) matmul.

    x_ref:   (T, C_in)
    wb_ref:  (C_in, BC)                  bottleneck 1x1 conv weight
    wf_ref:  ((k_max+1)*BC, C_out)       fused branch weight (im2col layout)
    o_ref:   (T, C_out)                  pre-BN concat output
    ps_ref:  (1, C_out)                  per-batch sum       (BN partial stats)
    pq_ref:  (1, C_out)                  per-batch sum-of-sq (BN partial stats)
    pad_ref: (T + k_max - 1, BC)         VMEM scratch: zero-padded h
    """
    T = x_ref.shape[0]
    bc = wb_ref.shape[1]
    k_max = pad_ref.shape[0] - T + 1
    left = (k_max - 1) // 2                     # PyTorch 'same' left padding

    # Bottleneck 1x1 conv == channel matmul (default MXU precision).
    h = jnp.dot(x_ref[...], wb_ref[...], preferred_element_type=jnp.float32)

    # Zero-padded copy of h for the 'same' conv taps (single VMEM scratch).
    pad_ref[...] = jnp.zeros_like(pad_ref)
    pad_ref[pl.ds(left, T), :] = h

    # MaxPool1d(kernel=3, stride=1, padding=1) along time (-inf padding).
    neg = jnp.full((1, bc), -jnp.inf, h.dtype)
    mp = jnp.maximum(h, jnp.concatenate([h[1:], neg], axis=0))
    mp = jnp.maximum(mp, jnp.concatenate([neg, h[:-1]], axis=0))

    # im2col: k_max shifted views of h + maxpool block -> ONE MXU matmul for
    # all branches; result is written lane-dense in a single store.
    cols = [pad_ref[pl.ds(m, T), :] for m in range(k_max)]
    cols.append(mp)
    col = jnp.concatenate(cols, axis=1)          # (T, (k_max + 1) * BC)
    y = jnp.dot(col, wf_ref[...], preferred_element_type=jnp.float32)

    o_ref[...] = y.astype(o_ref.dtype)
    ps_ref[...] = jnp.sum(y, axis=0, keepdims=True)
    pq_ref[...] = jnp.sum(y * y, axis=0, keepdims=True)


def _scale_shift_relu_kernel(x_ref, scale_ref, shift_ref, o_ref):
    """Tiled BatchNorm apply (precomputed scale/shift) + ReLU."""
    y = x_ref[...] * scale_ref[...] + shift_ref[...]
    o_ref[...] = jnp.maximum(y, 0.0).astype(o_ref.dtype)


def _build_fused_weight(conv_ws, wm_pt, kernel_sizes, bc, nf):
    """Pack all branch weights into one ((k_max+1)*BC, C_out) im2col weight.

    conv_ws: list of PyTorch-layout (NF, BC, k) conv weights.
    wm_pt:   PyTorch-layout (NF, BC, 1) maxpool-conv weight.
    """
    k_max = max(kernel_sizes)
    left_max = (k_max - 1) // 2
    n_br = len(kernel_sizes)
    c_out = nf * (n_br + 1)
    w = jnp.zeros(((k_max + 1) * bc, c_out), jnp.float32)
    for b, (w_pt, k) in enumerate(zip(conv_ws, kernel_sizes)):
        left_k = (k - 1) // 2
        for j in range(k):
            m = j - left_k + left_max           # tap j -> im2col column block m
            w = w.at[m * bc:(m + 1) * bc, b * nf:(b + 1) * nf].set(
                jnp.transpose(w_pt[:, :, j]))
    # maxpool block (last BC im2col columns) -> last NF output channels
    w = w.at[k_max * bc:, n_br * nf:].set(jnp.transpose(wm_pt[:, :, 0]))
    return w


def inception_module_forward(x_ncw, params, kernel_sizes, eps=1e-5):
    """x_ncw: (B, C_in, T) float32; PyTorch-layout weights in `params`.

    Returns (B, NF * (len(kernel_sizes) + 1), T).
    """
    wb_pt = params["bottleneck_w"]       # (BC, C_in, 1)
    conv_ws = params["conv_ws"]          # list of (NF, BC, k)
    wm_pt = params["maxpool_conv_w"]     # (NF, BC, 1)
    gamma = params["gamma"]              # (C_out,)
    beta = params["beta"]                # (C_out,)

    B, C_in, T = x_ncw.shape
    BC = wb_pt.shape[0]
    NF = wm_pt.shape[0]
    n_br = len(kernel_sizes)
    C_out = NF * (n_br + 1)
    k_max = max(kernel_sizes)

    wb = jnp.transpose(wb_pt[:, :, 0])                       # (C_in, BC)
    wf = _build_fused_weight(conv_ws, wm_pt, kernel_sizes, BC, NF)

    # TODO(synk): computing in NCW inside the kernel (channels on sublanes,
    # time on lanes) would remove both boundary transposes for large tensors.
    x_btc = jnp.transpose(x_ncw, (0, 2, 1))                  # (B, T, C_in)

    concat, psum, psq = pl.pallas_call(
        _inception_concat_kernel,
        out_shape=(
            jax.ShapeDtypeStruct((B, T, C_out), jnp.float32),
            jax.ShapeDtypeStruct((B, 1, C_out), jnp.float32),
            jax.ShapeDtypeStruct((B, 1, C_out), jnp.float32),
        ),
        grid=(B,),
        in_specs=[
            pl.BlockSpec((None, T, C_in), lambda b: (b, 0, 0)),
            pl.BlockSpec((C_in, BC), lambda b: (0, 0)),
            pl.BlockSpec(((k_max + 1) * BC, C_out), lambda b: (0, 0)),
        ],
        out_specs=(
            pl.BlockSpec((None, T, C_out), lambda b: (b, 0, 0)),
            pl.BlockSpec((None, 1, C_out), lambda b: (b, 0, 0)),
            pl.BlockSpec((None, 1, C_out), lambda b: (b, 0, 0)),
        ),
        scratch_shapes=[pltpu.VMEM((T + k_max - 1, BC), jnp.float32)],
        compiler_params=pltpu.CompilerParams(dimension_semantics=("parallel",)),
    )(x_btc, wb, wf)

    # Reduce BN partial stats in plain JAX (tiny: (B, C_out)).
    n = B * T
    mean = jnp.sum(psum, axis=(0, 1)) / n
    var = jnp.sum(psq, axis=(0, 1)) / n - mean * mean        # biased variance
    inv = lax.rsqrt(var + eps)
    scale = (gamma * inv).reshape(1, C_out)
    shift = (beta - mean * gamma * inv).reshape(1, C_out)

    # Tiled, pipelined normalize + ReLU pass (never loads full tensor untiled).
    tT = min(T, 512)
    nT = pl.cdiv(T, tT)
    y = pl.pallas_call(
        _scale_shift_relu_kernel,
        out_shape=jax.ShapeDtypeStruct((B, T, C_out), jnp.float32),
        grid=(B, nT),
        in_specs=[
            pl.BlockSpec((None, tT, C_out), lambda b, t: (b, t, 0)),
            pl.BlockSpec((1, C_out), lambda b, t: (0, 0)),
            pl.BlockSpec((1, C_out), lambda b, t: (0, 0)),
        ],
        out_specs=pl.BlockSpec((None, tT, C_out), lambda b, t: (b, t, 0)),
        compiler_params=pltpu.CompilerParams(
            dimension_semantics=("parallel", "parallel")),
    )(concat, scale, shift)

    return jnp.transpose(y, (0, 2, 1))                       # back to NCW


def reference_forward(x_ncw, pt_params, kernel_sizes, eps=1e-5):
    """Pure-JAX reference with PyTorch (O, I, K) weight layout (HIGHEST prec)."""
    wb_pt, convs_pt, wm_pt, gamma, beta = pt_params
    dn = ('NCH', 'OIH', 'NCH')
    hp = lax.Precision.HIGHEST
    h = lax.conv_general_dilated(x_ncw, wb_pt, (1,), 'VALID',
                                 dimension_numbers=dn, precision=hp)
    outs = []
    for w_pt, k in zip(convs_pt, kernel_sizes):
        left = (k - 1) // 2
        right = (k - 1) - left
        outs.append(lax.conv_general_dilated(h, w_pt, (1,), [(left, right)],
                                             dimension_numbers=dn, precision=hp))
    m = lax.reduce_window(h, -jnp.inf, lax.max, (1, 1, 3), (1, 1, 1),
                          [(0, 0), (0, 0), (1, 1)])
    outs.append(lax.conv_general_dilated(m, wm_pt, (1,), 'VALID',
                                         dimension_numbers=dn, precision=hp))
    o = jnp.concatenate(outs, axis=1)                        # (B, C_out, T)
    mean = jnp.mean(o, axis=(0, 2), keepdims=True)
    var = jnp.mean((o - mean) ** 2, axis=(0, 2), keepdims=True)
    y = (o - mean) * lax.rsqrt(var + eps) * gamma[None, :, None] + beta[None, :, None]
    return jnp.maximum(y, 0.0)


if __name__ == "__main__":
    key = jax.random.PRNGKey(0)
    B, C_in, T = 2, 4, 16
    n_filters, bottleneck_channels = 8, 8
    kernel_sizes = [3, 5, 7]
    C_out = n_filters * (len(kernel_sizes) + 1)

    keys = jax.random.split(key, 7)
    x = jax.random.normal(keys[0], (B, C_in, T), jnp.float32)
    # Deterministic synthetic weights in PyTorch (out_ch, in_ch, k) layout.
    wb_pt = jax.random.normal(keys[1], (bottleneck_channels, C_in, 1),
                              jnp.float32) * 0.3
    convs_pt = [jax.random.normal(keys[2 + i],
                                  (n_filters, bottleneck_channels, k),
                                  jnp.float32) * 0.2
                for i, k in enumerate(kernel_sizes)]
    wm_pt = jax.random.normal(keys[5], (n_filters, bottleneck_channels, 1),
                              jnp.float32) * 0.3
    gb = jax.random.normal(keys[6], (2, C_out), jnp.float32)
    gamma = 1.0 + 0.1 * gb[0]
    beta = 0.1 * gb[1]

    params = {
        "bottleneck_w": wb_pt,
        "conv_ws": convs_pt,
        "maxpool_conv_w": wm_pt,
        "gamma": gamma,
        "beta": beta,
    }

    out = inception_module_forward(x, params, kernel_sizes)
    out = jax.block_until_ready(out)

    ref = reference_forward(x, (wb_pt, convs_pt, wm_pt, gamma, beta),
                            kernel_sizes)
    # Looser tolerance than before: kernel matmuls now run at default MXU
    # precision instead of Precision.HIGHEST (per perf review).
    np.testing.assert_allclose(np.asarray(out), np.asarray(ref),
                               rtol=3e-2, atol=3e-2)
    print("KERNEL_OK")
</pallas_src>

<mosaic_0001>
module attributes {stable_mosaic.version = 11 : i64} {
  func.func @_inception_concat_kernel(%arg0: i32, %arg1: memref<1x16x4xf32, #tpu.memory_space<vmem>>, %arg2: memref<4x8xf32, #tpu.memory_space<vmem>>, %arg3: memref<64x32xf32, #tpu.memory_space<vmem>>, %arg4: memref<1x16x32xf32, #tpu.memory_space<vmem>>, %arg5: memref<1x1x32xf32, #tpu.memory_space<vmem>>, %arg6: memref<1x1x32xf32, #tpu.memory_space<vmem>>, %arg7: memref<22x8xf32, #tpu.memory_space<vmem>>) attributes {dimension_semantics = [#tpu.dimension_semantics<parallel>], iteration_bounds = array<i64: 2>, scalar_prefetch = 0 : i64, scratch_operands = 1 : i64, tpu.core_type = #tpu.core_type<tc>, window_params = [{transform_indices = @transform_0, window_bounds = array<i64: 1, 16, 4>}, {pipeline_mode = #tpu.pipeline_mode<synchronous>, transform_indices = @transform_1, window_bounds = array<i64: 4, 8>}, {pipeline_mode = #tpu.pipeline_mode<synchronous>, transform_indices = @transform_2, window_bounds = array<i64: 64, 32>}, {transform_indices = @transform_3, window_bounds = array<i64: 1, 16, 32>}, {transform_indices = @transform_4, window_bounds = array<i64: 1, 1, 32>}, {transform_indices = @transform_5, window_bounds = array<i64: 1, 1, 32>}]} {
    %c0 = arith.constant 0 : index
    %c0_0 = arith.constant 0 : index
    %c0_1 = arith.constant 0 : index
    %0 = vector.load %arg1[%c0, %c0_0, %c0_1] : memref<1x16x4xf32, #tpu.memory_space<vmem>>, vector<1x16x4xf32>
    %1 = vector.shape_cast %0 : vector<1x16x4xf32> to vector<16x4xf32>
    %c0_2 = arith.constant 0 : index
    %c0_3 = arith.constant 0 : index
    %2 = vector.load %arg2[%c0_2, %c0_3] : memref<4x8xf32, #tpu.memory_space<vmem>>, vector<4x8xf32>
    %cst = arith.constant dense<0.000000e+00> : vector<16x8xf32>
    %3 = tpu.matmul %1, %2, %cst {dimension_numbers = #tpu.dot_dimension_numbers<[1], [0], [0], [1], [0, 0, 1, 1], [], []>} : vector<16x4xf32>, vector<4x8xf32>, vector<16x8xf32> -> vector<16x8xf32>
    %cst_4 = arith.constant 0.000000e+00 : f32
    %4 = vector.broadcast %cst_4 : f32 to vector<22x8xf32>
    %c0_5 = arith.constant 0 : index
    %c0_6 = arith.constant 0 : index
    %5 = vector.load %arg7[%c0_5, %c0_6] : memref<22x8xf32, #tpu.memory_space<vmem>>, vector<22x8xf32>
    tpu.vector_store %arg7[%c0_5, %c0_6], %4 {strides = array<i32>} : memref<22x8xf32, #tpu.memory_space<vmem>>, vector<22x8xf32>,
    %c3 = arith.constant 3 : index
    %c0_7 = arith.constant 0 : index
    %6 = vector.load %arg7[%c3, %c0_7] : memref<22x8xf32, #tpu.memory_space<vmem>>, vector<16x8xf32>
    tpu.vector_store %arg7[%c3, %c0_7], %3 {strides = array<i32>} : memref<22x8xf32, #tpu.memory_space<vmem>>, vector<16x8xf32>,
    %cst_8 = arith.constant 0xFF800000 : f32
    %7 = vector.broadcast %cst_8 : f32 to vector<1x8xf32>
    %8 = vector.extract_strided_slice %3 {offsets = [1, 0], sizes = [15, 8], strides = [1, 1]} : vector<16x8xf32> to vector<15x8xf32>
    %9 = tpu.concatenate %8, %7 in 0 : vector<15x8xf32>, vector<1x8xf32> -> vector<16x8xf32>
    %10 = arith.maximumf %3, %9 : vector<16x8xf32>
    %11 = vector.extract_strided_slice %3 {offsets = [0, 0], sizes = [15, 8], strides = [1, 1]} : vector<16x8xf32> to vector<15x8xf32>
    %12 = tpu.concatenate %7, %11 in 0 : vector<1x8xf32>, vector<15x8xf32> -> vector<16x8xf32>
    %13 = arith.maximumf %10, %12 : vector<16x8xf32>
    %c0_9 = arith.constant 0 : index
    %c0_10 = arith.constant 0 : index
    %14 = vector.load %arg7[%c0_9, %c0_10] : memref<22x8xf32, #tpu.memory_space<vmem>>, vector<16x8xf32>
    %c1 = arith.constant 1 : index
    %c0_11 = arith.constant 0 : index
    %15 = vector.load %arg7[%c1, %c0_11] : memref<22x8xf32, #tpu.memory_space<vmem>>, vector<16x8xf32>
    %c2 = arith.constant 2 : index
    %c0_12 = arith.constant 0 : index
    %16 = vector.load %arg7[%c2, %c0_12] : memref<22x8xf32, #tpu.memory_space<vmem>>, vector<16x8xf32>
    %c3_13 = arith.constant 3 : index
    %c0_14 = arith.constant 0 : index
    %17 = vector.load %arg7[%c3_13, %c0_14] : memref<22x8xf32, #tpu.memory_space<vmem>>, vector<16x8xf32>
    %c4 = arith.constant 4 : index
    %c0_15 = arith.constant 0 : index
    %18 = vector.load %arg7[%c4, %c0_15] : memref<22x8xf32, #tpu.memory_space<vmem>>, vector<16x8xf32>
    %c5 = arith.constant 5 : index
    %c0_16 = arith.constant 0 : index
    %19 = vector.load %arg7[%c5, %c0_16] : memref<22x8xf32, #tpu.memory_space<vmem>>, vector<16x8xf32>
    %c6 = arith.constant 6 : index
    %c0_17 = arith.constant 0 : index
    %20 = vector.load %arg7[%c6, %c0_17] : memref<22x8xf32, #tpu.memory_space<vmem>>, vector<16x8xf32>
    %21 = tpu.concatenate %14, %15, %16, %17, %18, %19, %20, %13 in 1 : vector<16x8xf32>, vector<16x8xf32>, vector<16x8xf32>, vector<16x8xf32>, vector<16x8xf32>, vector<16x8xf32>, vector<16x8xf32>, vector<16x8xf32> -> vector<16x64xf32>
    %c0_18 = arith.constant 0 : index
    %c0_19 = arith.constant 0 : index
    %22 = vector.load %arg3[%c0_18, %c0_19] : memref<64x32xf32, #tpu.memory_space<vmem>>, vector<64x32xf32>
    %cst_20 = arith.constant dense<0.000000e+00> : vector<16x32xf32>
    %23 = tpu.matmul %21, %22, %cst_20 {dimension_numbers = #tpu.dot_dimension_numbers<[1], [0], [0], [1], [0, 0, 1, 1], [], []>} : vector<16x64xf32>, vector<64x32xf32>, vector<16x32xf32> -> vector<16x32xf32>
    %c0_21 = arith.constant 0 : index
    %c0_22 = arith.constant 0 : index
    %c0_23 = arith.constant 0 : index
    %24 = vector.load %arg4[%c0_21, %c0_22, %c0_23] : memref<1x16x32xf32, #tpu.memory_space<vmem>>, vector<1x16x32xf32>
    %25 = vector.shape_cast %24 : vector<1x16x32xf32> to vector<16x32xf32>
    %26 = vector.shape_cast %23 : vector<16x32xf32> to vector<1x16x32xf32>
    tpu.vector_store %arg4[%c0_21, %c0_22, %c0_23], %26 {strides = array<i32>} : memref<1x16x32xf32, #tpu.memory_space<vmem>>, vector<1x16x32xf32>,
    %cst_24 = arith.constant dense<0.000000e+00> : vector<32xf32>
    %27 = vector.multi_reduction <add>, %23, %cst_24 [0] : vector<16x32xf32> to vector<32xf32>
    %28 = vector.shape_cast %27 : vector<32xf32> to vector<1x32xf32>
    %c0_25 = arith.constant 0 : index
    %c0_26 = arith.constant 0 : index
    %c0_27 = arith.constant 0 : index
    %29 = vector.load %arg5[%c0_25, %c0_26, %c0_27] : memref<1x1x32xf32, #tpu.memory_space<vmem>>, vector<1x1x32xf32>
    %30 = vector.shape_cast %29 : vector<1x1x32xf32> to vector<1x32xf32>
    %31 = vector.shape_cast %28 : vector<1x32xf32> to vector<1x1x32xf32>
    tpu.vector_store %arg5[%c0_25, %c0_26, %c0_27], %31 {strides = array<i32>} : memref<1x1x32xf32, #tpu.memory_space<vmem>>, vector<1x1x32xf32>,
    %32 = arith.mulf %23, %23 : vector<16x32xf32>
    %cst_28 = arith.constant dense<0.000000e+00> : vector<32xf32>
    %33 = vector.multi_reduction <add>, %32, %cst_28 [0] : vector<16x32xf32> to vector<32xf32>
    %34 = vector.shape_cast %33 : vector<32xf32> to vector<1x32xf32>
    %c0_29 = arith.constant 0 : index
    %c0_30 = arith.constant 0 : index
    %c0_31 = arith.constant 0 : index
    %35 = vector.load %arg6[%c0_29, %c0_30, %c0_31] : memref<1x1x32xf32, #tpu.memory_space<vmem>>, vector<1x1x32xf32>
    %36 = vector.shape_cast %35 : vector<1x1x32xf32> to vector<1x32xf32>
    %37 = vector.shape_cast %34 : vector<1x32xf32> to vector<1x1x32xf32>
    tpu.vector_store %arg6[%c0_29, %c0_30, %c0_31], %37 {strides = array<i32>} : memref<1x1x32xf32, #tpu.memory_space<vmem>>, vector<1x1x32xf32>,
    return
  }
  func.func @transform_0(%arg0: i32) -> (i32, i32, i32) {
    %c0_i32 = arith.constant 0 : i32
    %c0_i32_0 = arith.constant 0 : i32
    %c0_i32_1 = arith.constant 0 : i32
    return %arg0, %c0_i32, %c0_i32_0 : i32, i32, i32
  }
  func.func @transform_1(%arg0: i32) -> (i32, i32) {
    %c0_i32 = arith.constant 0 : i32
    %c0_i32_0 = arith.constant 0 : i32
    %c0_i32_1 = arith.constant 0 : i32
    return %c0_i32, %c0_i32_0 : i32, i32
  }
  func.func @transform_2(%arg0: i32) -> (i32, i32) {
    %c0_i32 = arith.constant 0 : i32
    %c0_i32_0 = arith.constant 0 : i32
    %c0_i32_1 = arith.constant 0 : i32
    return %c0_i32, %c0_i32_0 : i32, i32
  }
  func.func @transform_3(%arg0: i32) -> (i32, i32, i32) {
    %c0_i32 = arith.constant 0 : i32
    %c0_i32_0 = arith.constant 0 : i32
    %c0_i32_1 = arith.constant 0 : i32
    return %arg0, %c0_i32, %c0_i32_0 : i32, i32, i32
  }
  func.func @transform_4(%arg0: i32) -> (i32, i32, i32) {
    %c0_i32 = arith.constant 0 : i32
    %c0_i32_0 = arith.constant 0 : i32
    %c0_i32_1 = arith.constant 0 : i32
    return %arg0, %c0_i32, %c0_i32_0 : i32, i32, i32
  }
  func.func @transform_5(%arg0: i32) -> (i32, i32, i32) {
    %c0_i32 = arith.constant 0 : i32
    %c0_i32_0 = arith.constant 0 : i32
    %c0_i32_1 = arith.constant 0 : i32
    return %arg0, %c0_i32, %c0_i32_0 : i32, i32, i32
  }
}

</mosaic_0001>

<bundles_post_ra>
// kernel: tpu_custom_call.1
= control target key start
LH: loop header
LB: loop body
LE: loop exit
PB: predicated region body
PF: predicated region fallthrough
CT: control target
= control target key end

     0   :  { %11 = vsyncpa [#allocation4], 0  ;;  %s1075_s0 = inlined_call_operand.vmem [shape: f32[2,16,4], index: 0, kind: input, shape index: {}]   ;;  %s1076_s1 = inlined_call_operand.vmem [shape: f32[4,8], index: 1, kind: input, shape index: {}]   ;;  %s1077_s2 = inlined_call_operand.vmem [shape: f32[64,32], index: 2, kind: input, shape index: {}]   ;;  %s1078_s3 = inlined_call_operand.hbm [shape: f32[2,16,32], index: 3, kind: output, shape index: {0}]   ;;  %s1079_s4 = inlined_call_operand.hbm [shape: f32[2,1,32], index: 4, kind: output, shape index: {1}]   ;;  %s1080_s5 = inlined_call_operand.hbm [shape: f32[2,1,32], index: 5, kind: output, shape index: {2}]  }
   0x1   :  { %13 = vsyncpa [#allocation4 + $0x1], 0 }
   0x2   :  { %14 = vsyncpa [#allocation6], 0 }
   0x3   :  { %16 = vsyncpa [#allocation6 + $0x1], 0  ;;  %s869_s18 = smov 0   ;;  %s871_s19 = smov 0  }
   0x4   :  { %s873_s20 = smov 0   ;;  %s875_s21 = smov 0  }
   0x5 LB: > { %s890_s22 = sadd.s32 4294967295, %s828_s21   ;;  %s621_s23 = sadd.s32 4294967294, %s828_s21   ;;  %s828_s21 = sphi %s875_s21, %s1086_s21   ;;  %s824_s20 = sphi %s873_s20, %s1085_s20   ;;  %s820_s19 = sphi %s871_s19, %s1084_s19   ;;  %s816_s18 = sphi %s869_s18, %s1083_s18  }
   0x6   : > { %s894_s24 = sadd.s32 1, %s828_s21   ;;  %s97_s25 = sadd.s32 1, %s824_s20 }
   0x7   : > { %s94_s26 = ssub.s32 %s828_s21, %s894_s24  ;;  %p107_p0 = scmp.ne.s32.totalorder %s824_s20, %s820_s19 }
   0x8   : > { %p95_p1 = scmp.eq.s32.totalorder %s94_s26, 0  ;;  %p108_p2 = scmp.eq.s32.totalorder %s890_s22, 1 }
   0x9   : > { %p113_p3 = scmp.ne.s32.totalorder %s820_s19, %s816_s18  ;;  %p114_p4 = scmp.eq.s32.totalorder %s621_s23, 1 }
   0xa   : > { %s907_s27 = scalar_select %p95_p1, %s824_s20, %s97_s25  }
   0xb   : > { %p909_p5 = por %p108_p2, %p107_p0  ;;  %p913_p6 = por %p114_p4, %p113_p3 }
   0xc   : > { %p624_p7 = scmp.ge.s32.totalorder %s828_s21, 1  ;;  %p198_p8 = scmp.lt.s32.totalorder %s828_s21, 3 }
   0xe   : > { %p199_p9 = pnand %p624_p7, %p198_p8 }
   0xf   : > { %p234_p10 = scmp.lt.s32.totalorder (!%p199_p9), %s890_s22, 1  ;;  %s831_s12 = smov (!%p199_p9), 16  }
  0x10   : > { %202 = sbr.rel (%p199_p9) target bundleno = 474 (0x1da), region = 32  ;;  %s832_s13 = smov (!%p199_p9), 8  }
  0x11   : > { %s833_s14 = smov (!%p199_p9), 56   ;;  %s834_s15 = smov (!%p199_p9), 40  }
  0x12   : > { %s835_s16 = smov (!%p199_p9), 24   ;;  %s836_s17 = smov (!%p199_p9), 48  }
  0x13   : > { %s837_s25 = smov (!%p199_p9), 32   ;;  %s980_s6 = sand.u32 (!%p199_p9), 1, %s820_s19  }
  0x15   : > { %v241_v0 = vld [vmem:[%s1076_s1] sm:$0xf]  ;;  %vm249_vm0 = vcmask 1043456   ;;  %s235_s7 = scalar_select %p234_p10, %s890_s22, 1  ;;  %vm242_vm1 = vcmask 31744   ;;  %vm276_vm2 = vcmask 64512  }
  0x16   : > { %628 = vmatpush.msk.msra.mxu0 %vm249_vm0, %v241_v0  ;;  %v830_v3 = vmov 0.0   ;;  %vm279_vm3 = vcmask 62464   ;;  %vm285_vm4 = vcmask 1046528   ;;  %vm294_vm5 = vcmask 1040384   ;;  %v400_v30 = vld [vmem:[%s1077_s2 + $0x38] sm:$0xff]  ;;  %v399_v31 = vld [vmem:[%s1077_s2 + $0x30] sm:$0xff] }
  0x17   : > { %s638_s8 = sshll.u32 %s235_s7, 4  ;;  %277 = vst.msk [vmem:[#allocation2] sm:$0xff] %vm276_vm2, %v830_v3  ;;  %640 = vmatpush.msra.mxu2 %v400_v30  ;;  %416 = vmatpush.msra.mxu1 %v400_v30  ;;  %v398_v32 = vld [vmem:[%s1077_s2 + $0x28] sm:$0xff]  ;;  %v397_v33 = vld [vmem:[%s1077_s2 + $0x20] sm:$0xff]  ;;  %v396_v34 = vld [vmem:[%s1077_s2 + $0x18] sm:$0xff]  ;;  %vm375_vm6 = vcmask 130048  }
  0x18   : > { %s238_s11 = scalar_lea.vmem %s1075_s0, %s638_s8  ;;  %278 = vst.msk [vmem:[#allocation2 + $0x8] sm:$0xff] %vm276_vm2, %v830_v3  ;;  %v395_v35 = vld [vmem:[%s1077_s2 + $0x10] sm:$0xff]  ;;  %v394_v36 = vld [vmem:[%s1077_s2 + $0x8] sm:$0xff]  ;;  %v393_v37 = vld [vmem:[%s1077_s2] sm:$0xff]  ;;  %vm378_vm7 = vcmask 195584   ;;  %vm381_vm8 = vcmask 261120  }
  0x19   : > { %v239_v1 = vld [vmem:[%s238_s11] sm:$0xff]  ;;  %v240_v2 = vld [vmem:[%s238_s11 + $0x8] sm:$0xff]  ;;  %280 = vst.msk [vmem:[#allocation2 + $0x10] sm:$0x3f] %vm279_vm3, %v830_v3  ;;  %641 = vmatpush.msra.mxu2 %v399_v31  ;;  %417 = vmatpush.msra.mxu1 %v399_v31  ;;  %vm384_vm9 = vcmask 326656   ;;  %vm387_vm10 = vcmask 392192  }
  0x1a   : > { %629 = vmatmul.msk.f32.vlgmr.msra.gmra.mxu0 %vm242_vm1, %v239_v1  ;;  %vm390_vm11 = vcmask 457728   ;;  %vm401_vm12 = vcmask 523264   ;;  %s625_s7 = sshll.u32 %s980_s6, 4  ;;  %s639_s8 = sshll.u32 %s890_s22, 4 }
  0x1b   : > { %642 = vmatpush.msra.mxu2 %v398_v32  ;;  %418 = vmatpush.msra.mxu1 %v398_v32  ;;  %s476_s11 = scalar_lea.hbm %s1078_s3, %s639_s8 }
  0x1d   : > { %643 = vmatpush.msra.mxu2 %v397_v33  ;;  %419 = vmatpush.msra.mxu1 %v397_v33 }
  0x1f   : > { %644 = vmatpush.msra.mxu2 %v396_v34  ;;  %420 = vmatpush.msra.mxu1 %v396_v34 }
  0x21   : > { %645 = vmatpush.msra.mxu2 %v395_v35  ;;  %421 = vmatpush.msra.mxu1 %v395_v35 }
  0x22   : > { %630 = vmatmul.msk.f32.gmra.mxu0 %vm242_vm1, %v240_v2 }
  0x23   : > { %646 = vmatpush.msra.mxu2 %v394_v36  ;;  %422 = vmatpush.msra.mxu1 %v394_v36 }
  0x25   : > { %647 = vmatpush.msra.mxu2 %v393_v37  ;;  %423 = vmatpush.msra.mxu1 %v393_v37 }
  0x97   : > { %v270_v4 = vpop.f32.mrf.mxu0 }
  0x98   : > { %281 = vst.msk [vmem:[#allocation2 + $0x3] sm:$0xff] %vm276_vm2, %v270_v4  ;;  %v295_v10 = vrot.slane %v270_v4, 7  ;;  %v286_v23 = vrot.slane %v270_v4, 1 }
  0x9a   : > { %v300_v28 = vsel %vm294_vm5, -inf, %v295_v10 }
  0x9f   : > { %v273_v5 = vpop.f32.mrf.mxu0  ;;  %v307_v6 = vld [vmem:[#allocation2 + $0x2] sm:$0xff] }
  0xa0   : > { %v305_v7 = vld [vmem:[#allocation2 + $0x1] sm:$0xff]  ;;  %282 = vst.msk [vmem:[#allocation2 + $0xb] sm:$0xff] %vm276_vm2, %v273_v5  ;;  %v287_v8 = vrot.slane %v273_v5, 1  ;;  %v296_v9 = vrot.slane %v273_v5, 7  ;;  %327 = vrot.lane.b32.xlu2 %v307_v6, %s831_s12 }
  0xa1   : > { %319 = vrot.lane.b32.xlu0 %v305_v7, %s832_s13  ;;  %v309_v22 = vld [vmem:[#allocation2 + $0x3] sm:$0xff] }
  0xa2   : > { %v291_v11 = vsel %vm285_vm4, %v287_v8, -inf  ;;  %v297_v13 = vsel %vm294_vm5, %v295_v10, %v296_v9  ;;  %v288_v25 = vsel %vm285_vm4, %v286_v23, %v287_v8  ;;  %v303_v55 = vld [vmem:[#allocation2] sm:$0xff] }
  0xa3   : > { %v293_v12 = vmax.f32 %v273_v5, %v291_v11  ;;  %v292_v27 = vmax.f32 %v270_v4, %v288_v25 }
  0xa5   : > { %v302_v14 = vmax.f32 %v293_v12, %v297_v13  ;;  %v301_v29 = vmax.f32 %v292_v27, %v300_v28 }
  0xa7   : > { %369 = vrot.lane.b32.xlu1 %v302_v14, %s833_s14  ;;  %v314_v15 = vld [vmem:[#allocation2 + $0xd] sm:$0xff]  ;;  %v313_v21 = vld [vmem:[#allocation2 + $0x5] sm:$0xff] }
  0xa8   : > { %v306_v16 = vld [vmem:[#allocation2 + $0x9] sm:$0xff]  ;;  %353 = vrot.lane.b32.xlu2 %v314_v15, %s834_s15 }
  0xa9   : > { %321 = vrot.lane.b32.xlu0 %v306_v16, %s832_s13  ;;  %v310_v17 = vld [vmem:[#allocation2 + $0xb] sm:$0xff] }
  0xaa   : > { %v316_v18 = vld [vmem:[#allocation2 + $0xe] sm:$0xff]  ;;  %v311_v24 = vld [vmem:[#allocation2 + $0x4] sm:$0xff] }
  0xab   : > { %v308_v19 = vld [vmem:[#allocation2 + $0xa] sm:$0xff] }
  0xac   : > { %v312_v20 = vld [vmem:[#allocation2 + $0xc] sm:$0xff] }
  0xad   : > { %v315_v26 = vld [vmem:[#allocation2 + $0x6] sm:$0xff] }
  0xae   : > { %v304_v45 = vld [vmem:[#allocation2 + $0x8] sm:$0xff] }
  0xaf   : > { %337 = vrot.lane.b32.xlu1 %v310_v17, %s835_s16 }
  0xb0   : > { %361 = vrot.lane.b32.xlu2 %v316_v18, %s836_s17 }
  0xb1   : > { %329 = vrot.lane.b32.xlu0 %v308_v19, %s831_s12  ;;  %s221_s12 = scalar_lea.vmem [#allocation3], %s625_s7  ;;  %s726_s7 = scalar_lea.hbm %s1078_s3, 32 }
  0xb7   : > { %345 = vrot.lane.b32.xlu1 %v312_v20, %s837_s25 }
  0xb8   : > { %351 = vrot.lane.b32.xlu2 %v313_v21, %s834_s15  ;;  %s479_s15 = sshll.u32 %s476_s11, 4  ;;  %s480_s15 = int_to_ptr.hbm [resolvable:$true] %s479_s15 }
  0xb9   : > { %335 = vrot.lane.b32.xlu0 %v309_v22, %s835_s16  ;;  %s457_s16 = scalar_lea.sflag [#allocation4], %s980_s6 }
  0xbf   : > { %343 = vrot.lane.b32.xlu1 %v311_v24, %s837_s25 }
  0xc1   : > { %359 = vrot.lane.b32.xlu0 %v315_v26, %s836_s17  ;;  %s720_s17 = sshra.s32 %s480_s15, 4  ;;  %s721_s17 = int_to_ptr.hbm [resolvable:$true] %s720_s17 }
  0xc2   : > { %s722_s25 = scalar_lea.hbm %s721_s17, 16  ;;  %p727_p0 = scmp.lt.s32.totalorder %s721_s17, %s1078_s3 }
  0xc3   : > { %p723_p11 = scmp.ne.s32.totalorder %s721_s17, %s722_s25  ;;  %p728_p1 = scmp.lt.s32.totalorder %s726_s7, %s722_s25 }
  0xc5   : > { %p724_p12 = pnand %p723_p11, %p909_p5  ;;  %p729_p2 = por %p728_p1, %p727_p0 }
  0xc7   : > { %367 = vrot.lane.b32.xlu1 %v301_v29, %s833_s14  ;;  %s477_s14 = sshll.u32 %s221_s12, 4  ;;  %p725_p13 = pneg %p724_p12  ;;  %s478_s14 = int_to_ptr.vmem [resolvable:$true] %s477_s14 }
  0xc9   : > { %p730_p3 = pnand %p729_p2, %p725_p13 }
  0xfa   : > { %v328_v39 = vpop.permute.xlu2 %327 }
 0x102   : > { %v354_v42 = vpop.permute.xlu2 %353 }
 0x10a   : > { %v362_v51 = vpop.permute.xlu2 %361 }
 0x112   : > { %v352_v62 = vpop.permute.xlu2 %351 }
 0x113   : > { %v320_v38 = vpop.permute.xlu0 %319 }
 0x114   : > { %v373_v57 = vsel %vm276_vm2, %v303_v55, %v320_v38 }
 0x115   : > { %v376_v58 = vsel %vm375_vm6, %v373_v57, %v328_v39 }
 0x119   : > { %v370_v40 = vpop.permute.xlu1 %369 }
 0x11b   : > { %v322_v41 = vpop.permute.xlu0 %321 }
 0x11c   : > { %v374_v46 = vsel %vm276_vm2, %v304_v45, %v322_v41 }
 0x121   : > { %v338_v43 = vpop.permute.xlu1 %337 }
 0x123   : > { %v330_v44 = vpop.permute.xlu0 %329 }
 0x124   : > { %v377_v47 = vsel %vm375_vm6, %v374_v46, %v330_v44 }
 0x125   : > { %v380_v49 = vsel %vm378_vm7, %v377_v47, %v338_v43 }
 0x129   : > { %v346_v48 = vpop.permute.xlu1 %345 }
 0x12a   : > { %v383_v50 = vsel %vm381_vm8, %v380_v49, %v346_v48 }
 0x12b   : > { %v386_v52 = vsel %vm384_vm9, %v383_v50, %v354_v42  ;;  %v336_v53 = vpop.permute.xlu0 %335 }
 0x12c   : > { %v389_v54 = vsel %vm387_vm10, %v386_v52, %v362_v51  ;;  %v379_v60 = vsel %vm378_vm7, %v376_v58, %v336_v53 }
 0x12d   : > { %v392_v56 = vsel %vm390_vm11, %v389_v54, %v370_v40 }
 0x12e   : > { %632 = vmatmul.msk.f32.vlgmr.msra.gmra.mxu2 %vm401_vm12, %v392_v56 }
 0x131   : > { %v344_v59 = vpop.permute.xlu1 %343 }
 0x132   : > { %v382_v61 = vsel %vm381_vm8, %v379_v60, %v344_v59 }
 0x133   : > { %v385_v63 = vsel %vm384_vm9, %v382_v61, %v352_v62  ;;  %v360_v0 = vpop.permute.xlu0 %359 }
 0x134   : > { %v388_v1 = vsel %vm387_vm10, %v385_v63, %v360_v0 }
 0x139   : > { %v368_v2 = vpop.permute.xlu1 %367 }
 0x13a   : > { %v391_v3 = vsel %vm390_vm11, %v388_v1, %v368_v2 }
 0x13b   : > { %631 = vmatmul.msk.f32.vlgmr.msra.gmra.mxu1 %vm401_vm12, %v391_v3 }
 0x1b1   : > { %v428_v4 = vpop.f32.mrf.mxu2 }
 0x1b2   : > { %432 = vst.msk [vmem:[%s221_s12 + $0x8] sm:$0xff] %vm381_vm8, %v428_v4  ;;  %v445_v5 = vmul.f32 %v428_v4, %v428_v4  ;;  %v434_v7 = vsel %vm381_vm8, %v428_v4, 0.0 }
 0x1b8   : > { %v425_v6 = vpop.f32.mrf.mxu1 }
 0x1b9   : > { %431 = vst.msk [vmem:[%s221_s12] sm:$0xff] %vm381_vm8, %v425_v6  ;;  %v433_v8 = vsel %vm381_vm8, %v425_v6, 0.0  ;;  %v444_v9 = vmul.f32 %v425_v6, %v425_v6 }
 0x1ba   : > { %v435_v10 = vadd.f32 %v434_v7, %v433_v8 }
 0x1bb   : > { %733 = shalt.err (!%p730_p3)
}
 0x1bc   : > { %s838_s10 = smov 128   ;;  %v447_v11 = vsel %vm381_vm8, %v445_v5, 0.0  ;;  %v446_v12 = vsel %vm381_vm8, %v444_v9, 0.0  ;;  %v436_v13 = vrot.slane %v435_v10, 4  ;;  %s491_s17 = scalar_lea.hbm %s1079_s4, %s890_s22  ;;  %vm442_vm13 = vcmask 253952  }
 0x1bd   : > { %648 = dma.vmem_to_hbm [thread:$0]  (%p909_p5), %s478_s14, 256, %s480_s15, %s457_s16, %s838_s10, %s838_s10, %s832_s13   ;;  %v448_v14 = vadd.f32 %v447_v11, %v446_v12 }
 0x1be   : > { %v437_v15 = vadd.f32 %v436_v13, %v435_v10  ;;  %s461_s25 = sand.u32 1, %s890_s22   ;;  %s504_s14 = scalar_lea.hbm %s1080_s5, %s890_s22 }
 0x1bf   : > { %v449_v16 = vrot.slane %v448_v14, 4  ;;  %s227_s15 = scalar_lea.vmem [#allocation5], %s980_s6  ;;  %s1017_s30 = sshll.u32 %s491_s17, 4  ;;  %s496_s30 = int_to_ptr.hbm [resolvable:$true] %s1017_s30 }
 0x1c0   : > { %v438_v17 = vrot.slane %v437_v15, 2  ;;  %s1015_s16 = sshll.u32 %s227_s15, 4  ;;  %s233_s7 = scalar_lea.vmem [#allocation7], %s980_s6  ;;  %s494_s16 = int_to_ptr.vmem [resolvable:$true] %s1015_s16 }
 0x1c1   : > { %v450_v18 = vadd.f32 %v449_v16, %v448_v14  ;;  %s1020_s8 = sshll.u32 %s233_s7, 4  ;;  %s1022_s9 = sshll.u32 %s504_s14, 4  ;;  %s507_s8 = int_to_ptr.vmem [resolvable:$true] %s1020_s8  ;;  %s509_s9 = int_to_ptr.hbm [resolvable:$true] %s1022_s9 }
 0x1c2   : > { %v439_v19 = vadd.f32 %v438_v17, %v437_v15  ;;  %s462_s22 = scalar_lea.sflag [#allocation6], %s461_s25  ;;  %s748_s10 = sshra.s32 %s496_s30, 4  ;;  %s749_s10 = int_to_ptr.hbm [resolvable:$true] %s748_s10 }
 0x1c3   : > { %v451_v20 = vrot.slane %v450_v18, 2  ;;  %s750_s6 = scalar_lea.hbm %s749_s10, 1  ;;  %s754_s17 = scalar_lea.hbm %s1079_s4, 2 }
 0x1c4   : > { %v440_v21 = vrot.slane %v439_v19, 1  ;;  %p751_p4 = scmp.ne.s32.totalorder %s749_s10, %s750_s6  ;;  %p755_p9 = scmp.lt.s32.totalorder %s749_s10, %s1079_s4 }
 0x1c5   : > { %v452_v22 = vadd.f32 %v451_v20, %v450_v18  ;;  %p756_p10 = scmp.lt.s32.totalorder %s754_s17, %s750_s6 }
 0x1c6   : > { %v441_v24 = vadd.f32 %v440_v21, %v439_v19  ;;  %p752_p7 = pnand %p751_p4, %p909_p5 }
 0x1c7   : > { %v453_v23 = vrot.slane %v452_v22, 1  ;;  %p757_p11 = por %p756_p10, %p755_p9 }
 0x1c8   : > { %443 = vst.msk [vmem:[%s227_s15] sm:$0x1] %vm442_vm13, %v441_v24  ;;  %p753_p8 = pneg %p752_p7 }
 0x1c9   : > { %v454_v25 = vadd.f32 %v453_v23, %v452_v22 }
 0x1ca   : > { %p758_p12 = pnand %p757_p11, %p753_p8 }
 0x1cc   : > { %761 = shalt.err (!%p758_p12)
}
 0x1cd   : > { %649 = dma.vmem_to_hbm [thread:$0]  (%p909_p5), %s494_s16, 16, %s496_s30, %s462_s22   ;;  %455 = vst.msk [vmem:[%s233_s7] sm:$0x1] %vm442_vm13, %v454_v25 }
 0x1ce   : > { %s776_s25 = sshra.s32 %s509_s9, 4  ;;  %s782_s6 = scalar_lea.hbm %s1080_s5, 2  ;;  %s777_s25 = int_to_ptr.hbm [resolvable:$true] %s776_s25 }
 0x1cf   : > { %s778_s14 = scalar_lea.hbm %s777_s25, 1  ;;  %p783_p2 = scmp.lt.s32.totalorder %s777_s25, %s1080_s5 }
 0x1d0   : > { %p779_p13 = scmp.ne.s32.totalorder %s777_s25, %s778_s14  ;;  %p784_p3 = scmp.lt.s32.totalorder %s782_s6, %s778_s14 }
 0x1d2   : > { %p780_p0 = pnand %p779_p13, %p909_p5  ;;  %p785_p4 = por %p784_p3, %p783_p2 }
 0x1d4   : > { %p781_p1 = pneg %p780_p0 }
 0x1d6   : > { %p786_p7 = pnand %p785_p4, %p781_p1 }
 0x1d8   : > { %789 = shalt.err (!%p786_p7)
}
 0x1d9   : > { %650 = dma.vmem_to_hbm [thread:$0]  (%p909_p5), %s507_s8, 16, %s509_s9, %s462_s22  }
 0x1da PF: > { %p664_p8 = scmp.ge.s32.totalorder %s828_s21, 2  ;;  %s520_s16 = sand.u32 1, %s816_s18  }
 0x1db   : > { %s521_s30 = scalar_lea.sflag [#allocation4], %s520_s16 }
 0x1dc   : > { %p655_p9 = pnand %p664_p8, %p913_p6 }
 0x1de   : > { %p656_p10 = pneg %p655_p9 }
 0x1e0   : > { %807 = dma.done.wait (%p656_p10), %s521_s30, 256  }
 0x1e1   : > { %809 = vsyncadd (%p656_p10), %s521_s30, 4294967040  ;;  %s530_s28 = sand.u32 1, %s621_s23  }
 0x1e2   : > { %s531_s7 = scalar_lea.sflag [#allocation6], %s530_s28 }
 0x1e3   : > { %811 = dma.done.wait (%p656_p10), %s531_s7, 32  }
 0x1e4   : > { %813 = vsyncadd (%p656_p10), %s531_s7, 4294967264  ;;  %p19_p5 = scmp.ge.s32.totalorder %s894_s24, 4   ;;  %s1083_s18 = smov %s820_s19 }
 0x1e5   : > { %s1084_s19 = smov %s824_s20  ;;  %s1085_s20 = smov %s907_s27 }
 0x1e6   : > { %s1086_s21 = smov %s894_s24  ;;  %21 = sbr.rel (!%p19_p5) target bundleno = 5 (0x5), region = 99 }
 0x1eb   :  { %545 = vsyncpa [#allocation4], 1 }
 0x1ec   :  { %547 = vsyncpa [#allocation4 + $0x1], 1 }
 0x1ed   :  { %548 = vsyncpa [#allocation6], 1 }
 0x1ee   :  { %550 = vsyncpa [#allocation6 + $0x1], 1 }

</bundles_post_ra>
